<compile_context>
chip_gen: v7x
topology: tpu7x:2x2x1
jax: 0.10.0
libtpu: 0.0.40
codegen_flags: <defaults>
</compile_context>

<pallas_src>
import jax
import jax.numpy as jnp
from jax.experimental import pallas as pl
from jax.experimental.pallas import tpu as pltpu


_LANE = 128
_MAX_W = 32 * 1024           # widest lane-dense slab width considered (256 * 128 lanes)
_MIN_GRID = 4                # >= 4 steps: pipelining engages; both v7x TCs get >= 2 steps
_MAX_BLOCK_BYTES = 8 << 20   # per-block ceiling even on big-VMEM generations


def _copy_kernel(x_ref, o_ref):
    # Identity copy of the current (row_tile, W) block.
    o_ref[...] = x_ref[...]


def _vmem_budget_bytes():
    """Usable VMEM for this chip generation, with headroom for Mosaic scratch."""
    try:
        cap = pltpu.get_tpu_info().vmem_capacity_bytes  # 128 MiB v5e/v6e, 64 MiB/TC v7x
    except Exception:
        cap = 64 << 20                                  # assume the smallest (v7x)
    return (cap * 3) // 4                               # ~96 MiB v5e/v6e, ~48 MiB v7x


def _choose_tiling(total, itemsize, target_block_bytes):
    """Pick (W, R, row_tile, grid) for a lane-dense (R, W) slab copy, or None."""
    # Widest multiple-of-128 divisor of `total`, capped at _MAX_W.
    W = None
    w = (min(_MAX_W, total) // _LANE) * _LANE
    while w >= _LANE:
        if total % w == 0:
            W = w
            break
        w -= _LANE
    if W is None:
        return None  # total not a multiple of 128 -> caller falls back

    R = total // W
    sub = max(8, 32 // max(1, itemsize))  # full-vreg sublane multiple for this dtype

    if R <= sub:
        # Full-extent row block (block rows == array rows is always legal).
        return W, R, R, 1

    row_bytes = W * itemsize
    # Cap rows-per-block by the VMEM-derived block-byte target ...
    rows_by_bytes = max(sub, (target_block_bytes // row_bytes) // sub * sub)
    # ... and, when the slab is big enough, by a minimum pipeline depth so the
    # grid never collapses to 1-2 steps on mid-size arrays.
    if R >= _MIN_GRID * sub:
        rows_by_grid = max(sub, (R // _MIN_GRID) // sub * sub)
        cap_rows = min(rows_by_bytes, rows_by_grid)
    else:
        cap_rows = rows_by_bytes

    # Prefer a divisor of R (no masked boundary block); otherwise a cdiv grid
    # with a masked boundary block (Pallas drops out-of-bounds stores).
    row_tile = None
    d = min(cap_rows, (R // sub) * sub)
    while d >= sub:
        if R % d == 0:
            row_tile = d
            break
        d -= sub
    if row_tile is None:
        row_tile = max(sub, min(cap_rows, (R // sub) * sub))
    return W, R, row_tile, pl.cdiv(R, row_tile)


def _pallas_copy_2d(slab, row_tile, grid, vmem_limit_bytes):
    """Copy an (R, W) lane-dense slab through VMEM, tiled over rows."""
    R, W = slab.shape
    nbytes = slab.size * jnp.dtype(slab.dtype).itemsize

    # 3-deep input buffering hides the in/out DMA turnaround on multi-step
    # grids; block sizing keeps (3 in + 2 out) buffers well inside the budget.
    if grid >= _MIN_GRID:
        in_spec = pl.BlockSpec((row_tile, W), lambda i: (i, 0),
                               pipeline_mode=pl.Buffered(3))
    else:
        in_spec = pl.BlockSpec((row_tile, W), lambda i: (i, 0))
    out_spec = pl.BlockSpec((row_tile, W), lambda i: (i, 0))

    return pl.pallas_call(
        _copy_kernel,
        out_shape=jax.ShapeDtypeStruct((R, W), slab.dtype),
        grid_spec=pltpu.PrefetchScalarGridSpec(
            num_scalar_prefetch=0,
            grid=(grid,),
            in_specs=[in_spec],
            out_specs=out_spec,
        ),
        compiler_params=pltpu.CompilerParams(
            # Row tiles shard across v7x's 2 TensorCores; no-op on v5e/v6e.
            dimension_semantics=("parallel",),
            vmem_limit_bytes=int(vmem_limit_bytes),
        ),
        cost_estimate=pl.CostEstimate(
            flops=0, transcendentals=0, bytes_accessed=2 * nbytes),
    )(slab)


def reshape_forward(x, shape, force_copy=False):
    """Equivalent of torch: x.view(-1, *shape).

    torch .view is metadata-only, so by default this is a zero-cost
    jnp.reshape (XLA bitcast, zero HBM traffic).  Pass force_copy=True if a
    freshly materialized buffer is required; that path runs the Pallas
    lane-dense slab-copy kernel (one HBM read + one HBM write).
    """
    total = x.size
    tail = 1
    for s in shape:
        tail *= s
    assert total % tail == 0, "input size not divisible by target shape"
    out_shape = (total // tail,) + tuple(shape)

    if not force_copy:
        return jnp.reshape(x, out_shape)          # metadata-only: the optimum

    itemsize = jnp.dtype(x.dtype).itemsize
    vmem_budget = _vmem_budget_bytes()
    # 8 MiB blocks on v5e/v6e (96 MiB budget), 4 MiB on v7x (48 MiB budget).
    target_block = max(1 << 20, min(_MAX_BLOCK_BYTES, vmem_budget // 12))

    tiling = _choose_tiling(total, itemsize, target_block)
    if tiling is None:
        # Element count not a multiple of 128: return the metadata-only view.
        # TODO(synk): masked-store tail path if a materializing copy of such
        # shapes is ever required.
        return jnp.reshape(x, out_shape)

    W, R, row_tile, grid = tiling
    slab = x.reshape(R, W)                        # metadata-only, no extra HBM pass
    out_slab = _pallas_copy_2d(slab, row_tile, grid, vmem_budget)
    return out_slab.reshape(out_shape)            # metadata-only


if __name__ == "__main__":
    key = jax.random.PRNGKey(0)
    # Small NCHW-style input: batch=2, channels=4, H=W=16
    x = jax.random.normal(key, (2, 4, 16, 16), dtype=jnp.float32)

    # Reshape target (the module's self.shape): view(-1, 4, 16, 16)
    target_shape = (4, 16, 16)
    ref = x.reshape((-1,) + target_shape)

    # Default path: metadata-only reshape (matches torch .view semantics).
    out_view = jax.block_until_ready(reshape_forward(x, target_shape))
    assert out_view.shape == ref.shape, (out_view.shape, ref.shape)
    assert out_view.dtype == ref.dtype
    assert bool(jnp.all(out_view == ref))

    # Materializing path: exercises the Pallas slab-copy kernel end to end.
    out_copy = jax.block_until_ready(
        reshape_forward(x, target_shape, force_copy=True))
    assert out_copy.shape == ref.shape, (out_copy.shape, ref.shape)
    assert out_copy.dtype == ref.dtype
    assert bool(jnp.all(out_copy == ref))

    print("KERNEL_OK")
</pallas_src>

<mosaic_0001>
module attributes {stable_mosaic.version = 11 : i64} {
  func.func @_copy_kernel(%arg0: i32, %arg1: memref<1x2048xf32, #tpu.memory_space<vmem>>, %arg2: memref<1x2048xf32, #tpu.memory_space<vmem>>) attributes {dimension_semantics = [#tpu.dimension_semantics<parallel>], iteration_bounds = array<i64: 1>, scalar_prefetch = 0 : i64, scratch_operands = 0 : i64, tpu.core_type = #tpu.core_type<tc>, window_params = [{transform_indices = @transform_0, window_bounds = array<i64: 1, 2048>}, {transform_indices = @transform_1, window_bounds = array<i64: 1, 2048>}]} {
    %c0 = arith.constant 0 : index
    %c0_0 = arith.constant 0 : index
    %0 = vector.load %arg1[%c0, %c0_0] : memref<1x2048xf32, #tpu.memory_space<vmem>>, vector<1x2048xf32>
    %c0_1 = arith.constant 0 : index
    %c0_2 = arith.constant 0 : index
    %1 = vector.load %arg2[%c0_1, %c0_2] : memref<1x2048xf32, #tpu.memory_space<vmem>>, vector<1x2048xf32>
    tpu.vector_store %arg2[%c0_1, %c0_2], %0 {strides = array<i32>} : memref<1x2048xf32, #tpu.memory_space<vmem>>, vector<1x2048xf32>,
    return
  }
  func.func @transform_0(%arg0: i32) -> (i32, i32) {
    %c0_i32 = arith.constant 0 : i32
    %c0_i32_0 = arith.constant 0 : i32
    return %arg0, %c0_i32 : i32, i32
  }
  func.func @transform_1(%arg0: i32) -> (i32, i32) {
    %c0_i32 = arith.constant 0 : i32
    %c0_i32_0 = arith.constant 0 : i32
    return %arg0, %c0_i32 : i32, i32
  }
}

</mosaic_0001>

<bundles_post_ra>
// kernel: tpu_custom_call.1
= control target key start
LH: loop header
LB: loop body
LE: loop exit
PB: predicated region body
PF: predicated region fallthrough
CT: control target
= control target key end

     0   :  { %6 = vsyncpa [#allocation3], 0  ;;  %s126_s0 = inlined_call_operand.hbm [shape: f32[1,2048], index: 0, kind: input, shape index: {}]   ;;  %s127_s1 = inlined_call_operand.hbm [shape: f32[1,2048], index: 1, kind: output, shape index: {}]  }
   0x1   :  { %7 = vsyncpa [#allocation4], 0  ;;  %s90_s6 = smov [#allocation2]   ;;  %s42_s10 = scalar_lea.hbm %s126_s0, 256 }
   0x2   :  { %s14_s7 = sshll.u32 %s90_s6, 4  ;;  %p43_p0 = scmp.ne.s32.totalorder %s126_s0, %s42_s10  ;;  %s15_s7 = int_to_ptr.vmem [resolvable:$true] %s14_s7 }
   0x3   :  { %p46_p1 = scmp.lt.u32.totalorder %s42_s10, %s126_s0 }
   0x5   :  { %p48_p2 = pnand %p46_p1, %p43_p0 }
   0x7   :  { %51 = shalt.err (!%p48_p2)
}
   0x8   :  { %s52_s15 = scalar_lea.vmem %s15_s7, 256  ;;  %p57_p4 = scmp.lt.s32.totalorder %s15_s7, %s15_s7 }
   0x9   :  { %p53_p3 = scmp.ne.s32.totalorder %s15_s7, %s52_s15  ;;  %p58_p5 = scmp.lt.s32.totalorder %s52_s15, %s52_s15 }
   0xb   :  { %p59_p6 = por %p58_p5, %p57_p4 }
   0xd   :  { %p60_p7 = pnand %p59_p6, %p53_p3 }
   0xf   :  { %63 = shalt.err (!%p60_p7)
}
  0x10   :  { %17 = dma.hbm_to_vmem [thread:$0]  %s126_s0, 256, %s15_s7, [#allocation3]  }
  0x11   :  { %86 = dma.done.wait [#allocation3], 256  }
  0x12   :  { %87 = vsyncadd [#allocation3], 4294967040  ;;  %s91_s18 = smov [#allocation5]   ;;  %v21_v0 = vld [vmem:[#allocation2] sm:$0xff]  ;;  %v22_v1 = vld [vmem:[#allocation2 + $0x8] sm:$0xff] }
  0x13   :  { %s31_s19 = sshll.u32 %s91_s18, 4  ;;  %23 = vst [vmem:[#allocation5] sm:$0xff] %v21_v0  ;;  %24 = vst [vmem:[#allocation5 + $0x8] sm:$0xff] %v22_v1  ;;  %s32_s19 = int_to_ptr.vmem [resolvable:$true] %s31_s19 }
  0x14   :  { %s64_s20 = scalar_lea.vmem %s32_s19, 256  ;;  %p69_p9 = scmp.lt.s32.totalorder %s32_s19, %s32_s19 }
  0x15   :  { %p65_p8 = scmp.ne.s32.totalorder %s32_s19, %s64_s20  ;;  %p70_p10 = scmp.lt.s32.totalorder %s64_s20, %s64_s20 }
  0x17   :  { %p71_p11 = por %p70_p10, %p69_p9 }
  0x19   :  { %p72_p12 = pnand %p71_p11, %p65_p8 }
  0x1b   :  { %75 = shalt.err (!%p72_p12)
}
  0x1c   :  { %s76_s0 = scalar_lea.hbm %s127_s1, 256 }
  0x1d   :  { %p77_p13 = scmp.ne.s32.totalorder %s127_s1, %s76_s0  ;;  %p80_p0 = scmp.lt.u32.totalorder %s76_s0, %s127_s1 }
  0x1f   :  { %p82_p1 = pnand %p80_p0, %p77_p13 }
  0x21   :  { %85 = shalt.err (!%p82_p1)
}
  0x22   :  { %34 = dma.vmem_to_hbm [thread:$0]  %s32_s19, 256, %s127_s1, [#allocation4]  }
  0x23   :  { %88 = dma.done.wait [#allocation4], 256  }
  0x24   :  { %89 = vsyncadd [#allocation4], 4294967040 }
  0x25   :  { %38 = vsyncpa [#allocation3], 1 }
  0x26   :  { %39 = vsyncpa [#allocation4], 1 }

</bundles_post_ra>
